<compile_context>
chip_gen: v7x
topology: tpu7x:2x2x1
jax: 0.10.0
libtpu: 0.0.40
codegen_flags: <defaults>
</compile_context>

<pallas_src>
import jax
import jax.numpy as jnp
from jax.experimental import pallas as pl
from jax.experimental.pallas import tpu as pltpu


def _semantic_attention_kernel(q_ref, k2_ref, v_ref, wt_ref, ut_ref, b_ref, wv_ref,
                               attn_ref, we_ref):
    bb = q_ref.shape[0]
    s = v_ref.shape[1]
    bn = wt_ref.shape[-1]

    # ---- projections: full-height MXU matmuls, f32 accumulation ----------------
    # Wh = W(query):  (BB, Q) @ (Q, Bn)
    wh = jnp.dot(q_ref[...], wt_ref[...], preferred_element_type=jnp.float32)    # (BB, Bn)
    # Uv = U(keys): batch fused into M:  (BB*S, K) @ (K, Bn)
    uv = jnp.dot(k2_ref[...], ut_ref[...], preferred_element_type=jnp.float32)   # (BB*S, Bn)
    # Free relayout when S % 8 == 0 (sublane-aligned); otherwise a per-step VMEM copy
    # (perf only, correctness unaffected).
    uv = uv.reshape(bb, s, bn)                                                    # (BB, S, Bn)

    # ---- energies = w . tanh(Wh + Uv + b) --------------------------------------
    # N=1 projection as VPU multiply + lane reduce instead of an MXU matmul.
    h = jnp.tanh(wh[:, None, :] + uv + b_ref[...])                                # (BB, S, Bn)
    e = jnp.sum(h * wv_ref[...], axis=-1)                                         # (BB, S)

    # ---- softmax over the sequence axis (f32, lane-dense) ----------------------
    m = jnp.max(e, axis=-1, keepdims=True)                                        # (BB, 1)
    p = jnp.exp(e - m)                                                            # (BB, S)
    denom = jnp.sum(p, axis=-1, keepdims=True)                                    # (BB, 1)
    inv = pl.reciprocal(denom, approx=True)        # EUP slot, ~free
    inv = inv * (2.0 - denom * inv)                # one Newton step -> ~f32-exact 1/denom
    wgt = p * inv                                                                 # (BB, S)

    # ---- weighted sum of values over S: batched MXU matmul ---------------------
    # 'bqs,bsv->bqv' with q=1 keeps wgt lane-dense (no XLU lane->sublane relayout) and
    # contracts S on the otherwise-idle MXU.
    attn = jnp.einsum('bqs,bsv->bqv',
                      wgt.astype(v_ref.dtype)[:, None, :], v_ref[...],
                      preferred_element_type=jnp.float32)[:, 0, :]               # (BB, V)

    attn_ref[...] = attn.astype(attn_ref.dtype)
    # Packed lane-dense (BB, 2S) output: [weights | energies].  Two static-slice stores into
    # one VMEM out block -> a single writeback stream per grid step.
    we_ref[:, :s] = wgt
    we_ref[:, s:] = e


def _device_vmem_params():
    """Return (block_budget_bytes, vmem_limit_bytes, num_tensorcores_per_chip)."""
    kind = ""
    try:
        kind = jax.devices()[0].device_kind.lower()
    except Exception:
        pass
    vmem_cap = None
    try:
        cap = getattr(pltpu.get_tpu_info(), "vmem_capacity_bytes", None)
        if cap:
            vmem_cap = int(cap)
    except Exception:
        pass

    mib = 1024 * 1024
    is_v7 = ("v7" in kind) or (vmem_cap is not None and vmem_cap <= 64 * mib)
    if is_v7:
        # 64 MiB VMEM per TensorCore, 2 TensorCores per chip: per-core budgets.
        return 12 * mib, 32 * mib, 2
    is_128mib_class = (
        any(g in kind for g in ("v4", "v5", "v6"))
        or (vmem_cap is not None and vmem_cap >= 100 * mib)
    )
    if is_128mib_class:
        # 128 MiB VMEM, single TensorCore: big blocks amortize per-step overhead and keep
        # the HBM pipe at the roofline.  (v5e: an explicit vmem_limit is mandatory since its
        # scoped default is only 16 MiB; deeper pl.Buffered(3) on the streamed inputs is a
        # further v5e option not applied here.)
        return 32 * mib, 64 * mib, 1
    # Unknown chip: stay v7x-conservative.
    return 12 * mib, 32 * mib, 1


def _choose_batch_tile(B, S, K, V, Q, Bn, stream_itemsize, out_itemsize,
                       block_budget_bytes, num_cores):
    """Pick the batch tile BB for grid=(cdiv(B, BB),)."""
    if B <= 8:
        return B                                   # tiny batch: one full-array block

    # Bytes per batch element counted against the per-step VMEM budget:
    #   * double-buffered DMA blocks (query/keys/values in, attn + packed w|e out)
    #   * live f32 temporaries inside the kernel body (uv, h, e/p/wgt, attn accumulator).
    dma_per_b = 2 * ((Q + S * (K + V)) * stream_itemsize + V * out_itemsize + 2 * S * 4)
    tmp_per_b = (2 * S * Bn + S * V + 4 * S + Bn + 2 * V) * 4
    per_b = dma_per_b + tmp_per_b

    bb = max(8, block_budget_bytes // max(per_b, 1))

    if num_cores > 1:
        # Multi-TensorCore parts (v7x): keep >= ~4 grid steps per core so each core has
        # something to pipeline; single-TC parts take the largest block that fits.
        bb = min(bb, max(8, B // (4 * num_cores)))

    bb = max(8, (bb // 8) * 8)                     # sublane (8) alignment for 2-D blocks
    return min(bb, B)


def semantic_attention(query, keys, values, W, U, b, w,
                       block_budget_bytes=None, vmem_limit_bytes=None):
    """query (B,Q), keys (B,S,K), values (B,S,V).
    W (Bn,Q), U (Bn,K), b (Bn,), w (1,Bn)  -- PyTorch nn.Linear weight layouts."""
    B, Q = query.shape
    _, S, K = keys.shape
    V = values.shape[-1]
    Bn = W.shape[0]

    budget, limit, n_cores = _device_vmem_params()
    if block_budget_bytes is not None:
        budget = block_budget_bytes
    if vmem_limit_bytes is not None:
        limit = vmem_limit_bytes

    stream_itemsize = max(query.dtype.itemsize, keys.dtype.itemsize, values.dtype.itemsize)
    out_itemsize = values.dtype.itemsize
    BB = _choose_batch_tile(B, S, K, V, Q, Bn, stream_itemsize, out_itemsize, budget, n_cores)
    grid = (pl.cdiv(B, BB),)

    # Keys pre-flattened (row-major, free reshape) so the in-kernel Uv matmul is a single
    # (BB*S, K) @ (K, Bn).  Weight matrices pre-transposed and cast to the streaming dtype;
    # bias / energy-projection row kept in f32 (applied post-matmul in f32).
    keys2 = keys.reshape(B * S, K)
    Wt = W.T.astype(query.dtype)                   # (Q, Bn)
    Ut = U.T.astype(keys.dtype)                    # (K, Bn)
    b_row = b.reshape(1, Bn).astype(jnp.float32)   # (1, Bn)
    wv_row = w.reshape(1, Bn).astype(jnp.float32)  # (1, Bn)

    out_shapes = (
        jax.ShapeDtypeStruct((B, V), values.dtype),     # attn_feats
        jax.ShapeDtypeStruct((B, 2 * S), jnp.float32),  # packed [weights | energies]
    )

    grid_spec = pltpu.PrefetchScalarGridSpec(
        num_scalar_prefetch=0,
        grid=grid,
        in_specs=[
            pl.BlockSpec((BB, Q), lambda i: (i, 0)),          # query
            pl.BlockSpec((BB * S, K), lambda i: (i, 0)),      # keys, batch fused into rows
            pl.BlockSpec((BB, S, V), lambda i: (i, 0, 0)),    # values
            pl.BlockSpec((Q, Bn), lambda i: (0, 0)),          # Wt (resident across steps)
            pl.BlockSpec((K, Bn), lambda i: (0, 0)),          # Ut (resident across steps)
            pl.BlockSpec((1, Bn), lambda i: (0, 0)),          # b
            pl.BlockSpec((1, Bn), lambda i: (0, 0)),          # w
        ],
        out_specs=[
            pl.BlockSpec((BB, V), lambda i: (i, 0)),
            pl.BlockSpec((BB, 2 * S), lambda i: (i, 0)),
        ],
    )

    # Advisory cost hint so XLA schedules neighbors around this memory-bound custom call.
    flops = int(2 * B * S * K * Bn + 2 * B * Q * Bn + 2 * B * S * Bn + 2 * B * S * V)
    transcendentals = int(B * S * Bn + B * S)
    bytes_accessed = int(
        (B * Q + B * S * K) * stream_itemsize + B * S * V * values.dtype.itemsize
        + (Q * Bn + K * Bn + 2 * Bn) * 4
        + B * V * out_itemsize + B * 2 * S * 4)

    attn, we = pl.pallas_call(
        _semantic_attention_kernel,
        out_shape=out_shapes,
        grid_spec=grid_spec,
        compiler_params=pltpu.CompilerParams(
            dimension_semantics=("parallel",),
            vmem_limit_bytes=limit,
        ),
        cost_estimate=pl.CostEstimate(
            flops=flops, transcendentals=transcendentals, bytes_accessed=bytes_accessed),
    )(query, keys2, values, Wt, Ut, b_row, wv_row)

    # Split the packed output and restore the PyTorch module's (B, S, 1) layout.
    weights = we[:, :S].reshape(B, S, 1)
    energies = we[:, S:].reshape(B, S, 1)
    return attn, weights, energies


def semantic_attention_ref(query, keys, values, W, U, b, w):
    Wh = query @ W.T                                      # (B, Bn)
    Uv = jnp.einsum('bsk,nk->bsn', keys, U)               # (B, S, Bn)
    e = jnp.tanh(Wh[:, None, :] + Uv + b) @ w.T           # (B, S, 1)
    wt = jax.nn.softmax(e, axis=1)
    attn = (values * wt).sum(axis=1)
    return attn, wt, e


if __name__ == "__main__":
    B, S = 2, 8
    query_size, key_size, value_size, bottleneck_size = 32, 32, 32, 16

    key = jax.random.PRNGKey(0)
    k1, k2, k3, k4, k5, k6 = jax.random.split(key, 6)

    query = jax.random.normal(k1, (B, query_size), dtype=jnp.float32)
    keys = jax.random.normal(k2, (B, S, key_size), dtype=jnp.float32)
    values = jax.random.normal(k3, (B, S, value_size), dtype=jnp.float32)

    # Deterministic parameters (PyTorch nn.Linear weight shapes; b = ones per __init__).
    W = jax.random.normal(k4, (bottleneck_size, query_size), dtype=jnp.float32) * 0.1
    U = jax.random.normal(k5, (bottleneck_size, key_size), dtype=jnp.float32) * 0.1
    w = jax.random.normal(k6, (1, bottleneck_size), dtype=jnp.float32) * 0.1
    b = jnp.ones((bottleneck_size,), dtype=jnp.float32)

    # ---- f32 check at the module's small shapes --------------------------------
    attn, weights, energies = semantic_attention(query, keys, values, W, U, b, w)
    jax.block_until_ready((attn, weights, energies))

    attn_r, weights_r, energies_r = semantic_attention_ref(query, keys, values, W, U, b, w)
    assert attn.shape == (B, value_size)
    assert weights.shape == (B, S, 1) and energies.shape == (B, S, 1)
    assert jnp.allclose(energies, energies_r, atol=1e-4)
    assert jnp.allclose(weights, weights_r, atol=1e-4)
    assert jnp.allclose(attn, attn_r, atol=1e-4)

    # ---- larger bf16 run: budget-driven tiling (single large block on 128-MiB parts) ----
    B2 = 64
    q2 = jax.random.normal(k1, (B2, query_size), jnp.float32).astype(jnp.bfloat16)
    ks2 = jax.random.normal(k2, (B2, S, key_size), jnp.float32).astype(jnp.bfloat16)
    vs2 = jax.random.normal(k3, (B2, S, value_size), jnp.float32).astype(jnp.bfloat16)
    a2, w2, e2 = semantic_attention(q2, ks2, vs2, W, U, b, w)
    jax.block_until_ready((a2, w2, e2))

    a2r, w2r, e2r = semantic_attention_ref(q2.astype(jnp.float32), ks2.astype(jnp.float32),
                                           vs2.astype(jnp.float32), W, U, b, w)
    assert jnp.allclose(e2, e2r, atol=3e-2)
    assert jnp.allclose(w2, w2r, atol=3e-2)
    assert jnp.allclose(a2.astype(jnp.float32), a2r, atol=5e-2)

    # ---- multi-step grid path: force a tiny block budget so grid has many steps ---------
    B3 = 256
    q3 = jax.random.normal(k1, (B3, query_size), dtype=jnp.float32)
    ks3 = jax.random.normal(k2, (B3, S, key_size), dtype=jnp.float32)
    vs3 = jax.random.normal(k3, (B3, S, value_size), dtype=jnp.float32)
    a3, w3, e3 = semantic_attention(q3, ks3, vs3, W, U, b, w,
                                    block_budget_bytes=64 * 1024)
    jax.block_until_ready((a3, w3, e3))
    a3r, w3r, e3r = semantic_attention_ref(q3, ks3, vs3, W, U, b, w)
    assert jnp.allclose(e3, e3r, atol=1e-4)
    assert jnp.allclose(w3, w3r, atol=1e-4)
    assert jnp.allclose(a3, a3r, atol=1e-4)

    print("KERNEL_OK")
</pallas_src>

<mosaic_0001>
module attributes {stable_mosaic.version = 11 : i64} {
  func.func @_semantic_attention_kernel(%arg0: i32, %arg1: memref<2x32xf32, #tpu.memory_space<vmem>>, %arg2: memref<16x32xf32, #tpu.memory_space<vmem>>, %arg3: memref<2x8x32xf32, #tpu.memory_space<vmem>>, %arg4: memref<32x16xf32, #tpu.memory_space<vmem>>, %arg5: memref<32x16xf32, #tpu.memory_space<vmem>>, %arg6: memref<1x16xf32, #tpu.memory_space<vmem>>, %arg7: memref<1x16xf32, #tpu.memory_space<vmem>>, %arg8: memref<2x32xf32, #tpu.memory_space<vmem>>, %arg9: memref<2x16xf32, #tpu.memory_space<vmem>>) attributes {dimension_semantics = [#tpu.dimension_semantics<parallel>], iteration_bounds = array<i64: 1>, scalar_prefetch = 0 : i64, scratch_operands = 0 : i64, tpu.core_type = #tpu.core_type<tc>, window_params = [{transform_indices = @transform_0, window_bounds = array<i64: 2, 32>}, {transform_indices = @transform_1, window_bounds = array<i64: 16, 32>}, {transform_indices = @transform_2, window_bounds = array<i64: 2, 8, 32>}, {pipeline_mode = #tpu.pipeline_mode<synchronous>, transform_indices = @transform_3, window_bounds = array<i64: 32, 16>}, {pipeline_mode = #tpu.pipeline_mode<synchronous>, transform_indices = @transform_4, window_bounds = array<i64: 32, 16>}, {pipeline_mode = #tpu.pipeline_mode<synchronous>, transform_indices = @transform_5, window_bounds = array<i64: 1, 16>}, {pipeline_mode = #tpu.pipeline_mode<synchronous>, transform_indices = @transform_6, window_bounds = array<i64: 1, 16>}, {transform_indices = @transform_7, window_bounds = array<i64: 2, 32>}, {transform_indices = @transform_8, window_bounds = array<i64: 2, 16>}]} {
    %c0 = arith.constant 0 : index
    %c0_0 = arith.constant 0 : index
    %0 = vector.load %arg1[%c0, %c0_0] : memref<2x32xf32, #tpu.memory_space<vmem>>, vector<2x32xf32>
    %c0_1 = arith.constant 0 : index
    %c0_2 = arith.constant 0 : index
    %1 = vector.load %arg4[%c0_1, %c0_2] : memref<32x16xf32, #tpu.memory_space<vmem>>, vector<32x16xf32>
    %cst = arith.constant dense<0.000000e+00> : vector<2x16xf32>
    %2 = tpu.matmul %0, %1, %cst {dimension_numbers = #tpu.dot_dimension_numbers<[1], [0], [0], [1], [0, 0, 1, 1], [], []>} : vector<2x32xf32>, vector<32x16xf32>, vector<2x16xf32> -> vector<2x16xf32>
    %c0_3 = arith.constant 0 : index
    %c0_4 = arith.constant 0 : index
    %3 = vector.load %arg2[%c0_3, %c0_4] : memref<16x32xf32, #tpu.memory_space<vmem>>, vector<16x32xf32>
    %c0_5 = arith.constant 0 : index
    %c0_6 = arith.constant 0 : index
    %4 = vector.load %arg5[%c0_5, %c0_6] : memref<32x16xf32, #tpu.memory_space<vmem>>, vector<32x16xf32>
    %cst_7 = arith.constant dense<0.000000e+00> : vector<16x16xf32>
    %5 = tpu.matmul %3, %4, %cst_7 {dimension_numbers = #tpu.dot_dimension_numbers<[1], [0], [0], [1], [0, 0, 1, 1], [], []>} : vector<16x32xf32>, vector<32x16xf32>, vector<16x16xf32> -> vector<16x16xf32>
    %6 = vector.shape_cast %5 : vector<16x16xf32> to vector<2x8x16xf32>
    %7 = vector.shape_cast %2 : vector<2x16xf32> to vector<2x1x16xf32>
    %8 = vector.broadcast %7 : vector<2x1x16xf32> to vector<2x8x16xf32>
    %9 = arith.addf %8, %6 : vector<2x8x16xf32>
    %c0_8 = arith.constant 0 : index
    %c0_9 = arith.constant 0 : index
    %10 = vector.load %arg6[%c0_8, %c0_9] : memref<1x16xf32, #tpu.memory_space<vmem>>, vector<1x16xf32>
    %11 = vector.shape_cast %10 : vector<1x16xf32> to vector<1x1x16xf32>
    %12 = vector.broadcast %11 : vector<1x1x16xf32> to vector<2x8x16xf32>
    %13 = arith.addf %9, %12 : vector<2x8x16xf32>
    %14 = math.tanh %13 : vector<2x8x16xf32>
    %c0_10 = arith.constant 0 : index
    %c0_11 = arith.constant 0 : index
    %15 = vector.load %arg7[%c0_10, %c0_11] : memref<1x16xf32, #tpu.memory_space<vmem>>, vector<1x16xf32>
    %16 = vector.shape_cast %15 : vector<1x16xf32> to vector<1x1x16xf32>
    %17 = vector.broadcast %16 : vector<1x1x16xf32> to vector<2x8x16xf32>
    %18 = arith.mulf %14, %17 : vector<2x8x16xf32>
    %cst_12 = arith.constant dense<0.000000e+00> : vector<2x8xf32>
    %19 = vector.multi_reduction <add>, %18, %cst_12 [2] : vector<2x8x16xf32> to vector<2x8xf32>
    %cst_13 = arith.constant dense<0xFF800000> : vector<2xf32>
    %20 = vector.multi_reduction <maximumf>, %19, %cst_13 [1] : vector<2x8xf32> to vector<2xf32>
    %21 = vector.shape_cast %20 : vector<2xf32> to vector<2x1xf32>
    %22 = vector.broadcast %21 : vector<2x1xf32> to vector<2x8xf32>
    %23 = arith.subf %19, %22 : vector<2x8xf32>
    %24 = math.exp %23 : vector<2x8xf32>
    %cst_14 = arith.constant dense<0.000000e+00> : vector<2xf32>
    %25 = vector.multi_reduction <add>, %24, %cst_14 [1] : vector<2x8xf32> to vector<2xf32>
    %26 = vector.shape_cast %25 : vector<2xf32> to vector<2x1xf32>
    %27 = tpu.reciprocal %26 {approx = true} : vector<2x1xf32> -> vector<2x1xf32>
    %28 = arith.mulf %26, %27 : vector<2x1xf32>
    %cst_15 = arith.constant 2.000000e+00 : f32
    %29 = vector.broadcast %cst_15 : f32 to vector<2x1xf32>
    %30 = arith.subf %29, %28 : vector<2x1xf32>
    %31 = arith.mulf %27, %30 : vector<2x1xf32>
    %32 = vector.broadcast %31 : vector<2x1xf32> to vector<2x8xf32>
    %33 = arith.mulf %24, %32 : vector<2x8xf32>
    %34 = vector.shape_cast %33 : vector<2x8xf32> to vector<2x1x8xf32>
    %c0_16 = arith.constant 0 : index
    %c0_17 = arith.constant 0 : index
    %c0_18 = arith.constant 0 : index
    %35 = vector.load %arg3[%c0_16, %c0_17, %c0_18] : memref<2x8x32xf32, #tpu.memory_space<vmem>>, vector<2x8x32xf32>
    "tpu.trace_start"() <{level = 10 : i32, message = "bqs,bsv->bqv"}> : () -> ()
    %cst_19 = arith.constant dense<0.000000e+00> : vector<2x1x32xf32>
    %36 = tpu.matmul %34, %35, %cst_19 {dimension_numbers = #tpu.dot_dimension_numbers<[2], [1], [1], [2], [0, 0, 0, 1, 1, 2], [0], [0]>} : vector<2x1x8xf32>, vector<2x8x32xf32>, vector<2x1x32xf32> -> vector<2x1x32xf32>
    "tpu.trace_stop"() : () -> ()
    %37 = vector.shape_cast %36 : vector<2x1x32xf32> to vector<2x32xf32>
    %c0_20 = arith.constant 0 : index
    %c0_21 = arith.constant 0 : index
    %38 = vector.load %arg8[%c0_20, %c0_21] : memref<2x32xf32, #tpu.memory_space<vmem>>, vector<2x32xf32>
    tpu.vector_store %arg8[%c0_20, %c0_21], %37 {strides = array<i32>} : memref<2x32xf32, #tpu.memory_space<vmem>>, vector<2x32xf32>,
    %c0_22 = arith.constant 0 : index
    %c0_23 = arith.constant 0 : index
    %39 = vector.load %arg9[%c0_22, %c0_23] : memref<2x16xf32, #tpu.memory_space<vmem>>, vector<2x8xf32>
    tpu.vector_store %arg9[%c0_22, %c0_23], %33 {strides = array<i32>} : memref<2x16xf32, #tpu.memory_space<vmem>>, vector<2x8xf32>,
    %c0_24 = arith.constant 0 : index
    %c8 = arith.constant 8 : index
    %40 = vector.load %arg9[%c0_24, %c8] : memref<2x16xf32, #tpu.memory_space<vmem>>, vector<2x8xf32>
    tpu.vector_store %arg9[%c0_24, %c8], %19 {strides = array<i32>} : memref<2x16xf32, #tpu.memory_space<vmem>>, vector<2x8xf32>,
    return
  }
  func.func @transform_0(%arg0: i32) -> (i32, i32) {
    %c0_i32 = arith.constant 0 : i32
    %c0_i32_0 = arith.constant 0 : i32
    return %arg0, %c0_i32 : i32, i32
  }
  func.func @transform_1(%arg0: i32) -> (i32, i32) {
    %c0_i32 = arith.constant 0 : i32
    %c0_i32_0 = arith.constant 0 : i32
    return %arg0, %c0_i32 : i32, i32
  }
  func.func @transform_2(%arg0: i32) -> (i32, i32, i32) {
    %c0_i32 = arith.constant 0 : i32
    %c0_i32_0 = arith.constant 0 : i32
    %c0_i32_1 = arith.constant 0 : i32
    return %arg0, %c0_i32, %c0_i32_0 : i32, i32, i32
  }
  func.func @transform_3(%arg0: i32) -> (i32, i32) {
    %c0_i32 = arith.constant 0 : i32
    %c0_i32_0 = arith.constant 0 : i32
    %c0_i32_1 = arith.constant 0 : i32
    return %c0_i32, %c0_i32_0 : i32, i32
  }
  func.func @transform_4(%arg0: i32) -> (i32, i32) {
    %c0_i32 = arith.constant 0 : i32
    %c0_i32_0 = arith.constant 0 : i32
    %c0_i32_1 = arith.constant 0 : i32
    return %c0_i32, %c0_i32_0 : i32, i32
  }
  func.func @transform_5(%arg0: i32) -> (i32, i32) {
    %c0_i32 = arith.constant 0 : i32
    %c0_i32_0 = arith.constant 0 : i32
    %c0_i32_1 = arith.constant 0 : i32
    return %c0_i32, %c0_i32_0 : i32, i32
  }
  func.func @transform_6(%arg0: i32) -> (i32, i32) {
    %c0_i32 = arith.constant 0 : i32
    %c0_i32_0 = arith.constant 0 : i32
    %c0_i32_1 = arith.constant 0 : i32
    return %c0_i32, %c0_i32_0 : i32, i32
  }
  func.func @transform_7(%arg0: i32) -> (i32, i32) {
    %c0_i32 = arith.constant 0 : i32
    %c0_i32_0 = arith.constant 0 : i32
    return %arg0, %c0_i32 : i32, i32
  }
  func.func @transform_8(%arg0: i32) -> (i32, i32) {
    %c0_i32 = arith.constant 0 : i32
    %c0_i32_0 = arith.constant 0 : i32
    return %arg0, %c0_i32 : i32, i32
  }
}

</mosaic_0001>

<bundles_post_ra>
// kernel: tpu_custom_call.1
= control target key start
LH: loop header
LB: loop body
LE: loop exit
PB: predicated region body
PF: predicated region fallthrough
CT: control target
= control target key end

     0   :  { %14 = vsyncpa [#allocation3], 0  ;;  %v681_v3 = vmov 0.0|0.0   ;;  %vm682_vm0 = vmmov 0   ;;  %v683_v8 = vmov 0.0   ;;  %s836_s0 = inlined_call_operand.vmem [shape: f32[2,32], index: 0, kind: input, shape index: {}]   ;;  %s837_s1 = inlined_call_operand.vmem [shape: f32[16,32], index: 1, kind: input, shape index: {}]   ;;  %s838_s2 = inlined_call_operand.vmem [shape: f32[2,8,32], index: 2, kind: input, shape index: {}]   ;;  %s839_s3 = inlined_call_operand.vmem [shape: f32[32,16], index: 3, kind: input, shape index: {}]   ;;  %s840_s4 = inlined_call_operand.vmem [shape: f32[32,16], index: 4, kind: input, shape index: {}]   ;;  %s841_s5 = inlined_call_operand.vmem [shape: f32[1,16], index: 5, kind: input, shape index: {}]   ;;  %s842_s6 = inlined_call_operand.vmem [shape: f32[1,16], index: 6, kind: input, shape index: {}]   ;;  %s843_s7 = inlined_call_operand.hbm [shape: f32[2,32], index: 7, kind: output, shape index: {0}]   ;;  %s844_s8 = inlined_call_operand.hbm [shape: f32[2,16], index: 8, kind: output, shape index: {1}]  }
   0x1   :  { %v31_v0 = vld [vmem:[%s839_s3] sm:$0xff]  ;;  %v32_v1 = vld [vmem:[%s839_s3 + $0x8] sm:$0xff]  ;;  %600 = vmatprep.subr.bf16.mxu0 %v681_v3  ;;  %v33_v6 = vld [vmem:[%s839_s3 + $0x10] sm:$0xff]  ;;  %576 = vmatprep.mubr.msk.f32.mxu0 %vm682_vm0, %v683_v8 }
   0x2   :  { %v111_v2 = vld [vmem:[%s840_s4] sm:$0xff]  ;;  %v601_v4 = vpack.c.bf16 %v32_v1, %v31_v0  ;;  %v112_v5 = vld [vmem:[%s840_s4 + $0x8] sm:$0xff]  ;;  %v34_v7 = vld [vmem:[%s839_s3 + $0x18] sm:$0xff] }
   0x3   :  { %v606_v9 = vpack.c.bf16 %v112_v5, %v111_v2  ;;  %v113_v10 = vld [vmem:[%s840_s4 + $0x10] sm:$0xff]  ;;  %v114_v11 = vld [vmem:[%s840_s4 + $0x18] sm:$0xff]  ;;  %v604_v12 = vpack.c.bf16 %v34_v7, %v33_v6  ;;  %v109_v14 = vld [vmem:[%s837_s1] sm:$0xff] }
   0x4   :  { %602 = vmatpush3.bf16.msra.mxu0 %v601_v4  ;;  %v610_v13 = vpack.c.bf16 %v114_v11, %v113_v10 }
   0x5   :  { %15 = vsyncpa [#allocation5], 0  ;;  %603 = vmatprep.subr.bf16.mxu0 %v681_v3  ;;  %607 = vmatprep.subr.bf16.mxu1 %v606_v9  ;;  %vm35_vm1 = vcmask 261120   ;;  %v30_v15 = vld [vmem:[%s836_s0] sm:$0x3]  ;;  %v110_v16 = vld [vmem:[%s837_s1 + $0x8] sm:$0xff]  ;;  %v200_v19 = vlaneseq }
   0x6   :  { %609 = vmatpush3.bf16.msra.mxu1 %v606_v9  ;;  %587 = vmatprep.mubr.msk.f32.mxu1 %vm35_vm1, %v109_v14  ;;  %v684_v17 = vmov 1966171168   ;;  %v549_v33 = vld [vmem:[%s841_s5] ss:$0 sm:$0xff]  ;;  %vm251_vm2 = vcmask 130048   ;;  %vm270_vm3 = vcmask 1041409  }
   0x7   :  { %611 = vmatprep.subr.bf16.mxu1 %v610_v13  ;;  %v198_v18 = vunpack.c.l.s4 %v684_v17  ;;  %v769_v21 = vshrl.u32 %v200_v19, 7  ;;  %v550_v39 = vld [vmem:[%s842_s6] ss:$0 sm:$0xff]  ;;  %v261_v46 = vand.u32 127, %v200_v19  ;;  %vm273_vm4 = vcmask 58368  }
   0x8   :  { %605 = vmatpush3.bf16.msra.mxu0 %v604_v12  ;;  %v685_v54 = vmov 0   ;;  %vm342_vm5 = vcmask 64512   ;;  %vm516_vm6 = vcmask 123968  }
   0x9   :  { %590 = vmatprep.subr.mxu0 %v683_v8  ;;  %v199_v20 = vunpack.c.0.s8 %v198_v18  ;;  %v773_v26 = vsub.s32 0, %v769_v21  ;;  %v264_v48 = vsub.s32 %v261_v46, %v769_v21  ;;  %622 = vset.pattern.permute.xlu0 %v685_v54  ;;  %v284_v55 = vsub.s32 1, %v769_v21 }
   0xa   :  { %613 = vmatpush3.bf16.msra.mxu1 %v610_v13  ;;  %621 = vset.pattern.permute.xlu1 %v685_v54  ;;  %v505_v18 = vadd.s32 4294967288, %v261_v46 }
   0xb   :  { %577 = vmatmul.mubr.msk.f32.vlgmr.msra.gmra.mrb[0].mxu0 %vm35_vm1, %v30_v15  ;;  %595 = vmatprep.subr.mxu1 %v683_v8  ;;  %v202_v22 = vsub.s32 %v199_v20, %v769_v21  ;;  %v333_v15 = vld [vmem:[%s838_s2 + $0x8] sm:$0xff] }
   0xc   :  { %592 = vmatprep.mubr.msk.f32.mxu0 %vm682_vm0, %v683_v8 }
   0xd   :  { %588 = vmatmul.mubr.msk.f32.vlgmr.msra.gmra.mrb[0].mxu1 %vm35_vm1, %v110_v16  ;;  %v332_v16 = vld [vmem:[%s838_s2] sm:$0xff]  ;;  %s686_s2 = smov [#allocation4]  }
   0xe   :  { %597 = vmatprep.mubr.msk.f32.mxu1 %vm682_vm0, %v683_v8  ;;  %596 = vmatpush3.msra.mxu1 %v333_v15  ;;  %s534_s29 = sshll.u32 %s686_s2, 4  ;;  %s535_s29 = int_to_ptr.vmem [resolvable:$true] %s534_s29 }
   0xf   :  { %591 = vmatpush3.msra.mxu0 %v332_v16  ;;  %s633_s30 = scalar_lea.vmem %s535_s29, 32  ;;  %p638_p1 = scmp.lt.s32.totalorder %s535_s29, %s535_s29 }
  0x10   :  { %p634_p0 = scmp.ne.s32.totalorder %s535_s29, %s633_s30  ;;  %p639_p2 = scmp.lt.s32.totalorder %s633_s30, %s633_s30 }
  0x12   :  { %p640_p3 = por %p639_p2, %p638_p1 }
  0x14   :  { %p641_p4 = pnand %p640_p3, %p634_p0 }
  0xde   :  { %v105_v23 = vpop.f32.mrb[0].mxu0 }
  0xdf   :  { %v203_v24 = vrot.slane %v105_v23, %v202_v22  ;;  %v578_v25 = vpop.f32.mrb[1].mxu0 }
  0xe0   :  { %v589_v27 = vpop.f32.mrb[0].mxu1 }
  0xe1   :  { %v204_v28 = vcombine.high %v203_v24, %v203_v24  ;;  %v211_v29 = vrot.slane %v203_v24, %v202_v22  ;;  %v187_v30 = vpop.f32.mrb[1].mxu1 }
  0xe3   :  { %v218_v31 = vrot.slane %v204_v28, %v202_v22  ;;  %v222_v32 = vrot.slane %v211_v29, %v773_v26  ;;  %v508_v22 = vsub.s32 %v505_v18, %v769_v21 }
  0xe5   :  { %v226_v34 = vrot.slane %v218_v31, %v773_v26  ;;  %v229_v35 = vadd.f32 %v222_v32, %v187_v30 }
  0xe7   :  { %v230_v36 = vadd.f32 %v589_v27, %v226_v34  ;;  %v238_v37 = vadd.f32 %v549_v33, %v229_v35 }
  0xe9   :  { %v239_v38 = vadd.f32 %v549_v33, %v230_v36  ;;  %623 = vtanh.f32 %v238_v37 }
  0xeb   :  { %625 = vtanh.f32 %v239_v38 }
  0xf3   :  { %v624_v40 = vpop.eup %623 }
  0xf4   :  { %v249_v41 = vmul.f32 %v624_v40, %v550_v39 }
  0xf5   :  { %v626_v42 = vpop.eup %625 }
  0xf6   :  { %v252_v43 = vsel %vm251_vm2, %v249_v41, 0.0  ;;  %v250_v44 = vmul.f32 %v626_v42, %v550_v39 }
  0xf7   :  { %253 = vadd.xlane.f32.xlu0 %v252_v43 }
  0xf8   :  { %v255_v45 = vsel %vm251_vm2, %v250_v44, 0.0 }
  0xfb   :  { %256 = vadd.xlane.f32.xlu0 %v255_v45 }
 0x184   :  { %v783_v47 = vpop.xlane.xlu0 %253 }
 0x185   :  { %v265_v50 = vrot.slane %v783_v47, %v264_v48 }
 0x188   :  { %v786_v49 = vpop.xlane.xlu0 %256 }
 0x189   :  { %v269_v51 = vrot.slane %v786_v49, %v264_v48  ;;  %v513_v23 = vrot.slane %v786_v49, %v508_v22 }
 0x18b   :  { %v271_v52 = vsel %vm270_vm3, %v269_v51, %v265_v50 }
 0x18c   :  { %v274_v53 = vsel %vm273_vm4, %v271_v52, -inf }
 0x18d   :  { %275 = vmax.xlane.f32.xlu1 %v274_v53 }
 0x21a   :  { %v276_v56 = vpop.xlane.xlu1 %275 }
 0x21b   :  { %v281_v57 = vrot.slane %v276_v56, %v773_v26  ;;  %v285_v58 = vrot.slane %v276_v56, %v284_v55 }
 0x21d   :  { %v288_v59 = vsub.f32 %v783_v47, %v281_v57  ;;  %v289_v60 = vsub.f32 %v786_v49, %v285_v58 }
 0x21f   :  { %v290_v61 = vmul.f32 1.442695, %v288_v59  ;;  %v292_v62 = vmul.f32 1.442695, %v289_v60 }
 0x221   :  { %627 = vpow2.f32 %v290_v61 }
 0x222   :  { %629 = vpow2.f32 %v292_v62 }
 0x22b   :  { %v628_v63 = vpop.eup %627 }
 0x22c   :  { %v630_v0 = vpop.eup %629  ;;  %297 = vperm.xlu1 %621, %v628_v63  }
 0x22d   :  { %300 = vperm.xlu0 %622, %v630_v0  }
 0x2ab   :  { %v298_v1 = vpop.permute.xlu1 %297 }
 0x2ac   :  { %v301_v2 = vpop.permute.xlu0 %300  ;;  %v305_v3 = vrot.slane %v298_v1, %v264_v48 }
 0x2ad   :  { %v309_v4 = vrot.slane %v301_v2, %v264_v48 }
 0x2af   :  { %v310_v5 = vsel %vm270_vm3, %v309_v4, %v305_v3 }
 0x2b0   :  { %v312_v6 = vsel %vm273_vm4, %v310_v5, 0.0 }
 0x2b1   :  { %313 = vadd.xlane.f32.xlu1 %v312_v6 }
 0x33e   :  { %v314_v7 = vpop.xlane.xlu1 %313 }
 0x33f   :  { %631 = vrcp.f32 %v314_v7 }
 0x349   :  { %v632_v8 = vpop.eup %631 }
 0x34a   :  { %v316_v9 = vmul.f32 %v632_v8, %v314_v7 }
 0x34c   :  { %v317_v10 = vsub.f32 2.0, %v316_v9 }
 0x34e   :  { %v318_v11 = vmul.f32 %v632_v8, %v317_v10 }
 0x350   :  { %v327_v12 = vrot.slane %v318_v11, %v284_v55  ;;  %v323_v13 = vrot.slane %v318_v11, %v773_v26  ;;  %v509_v26 = vrot.slane %v783_v47, %v508_v22 }
 0x352   :  { %v331_v14 = vmul.f32 %v630_v0, %v327_v12  ;;  %v330_v17 = vmul.f32 %v628_v63, %v323_v13  ;;  %v514_v28 = vsel %vm270_vm3, %v513_v23, %v509_v26 }
 0x354   :  { %417 = vperm.xlu0 %622, %v331_v14  }
 0x358   :  { %336 = vperm.xlu0 %622, %v330_v17  }
 0x3d3   :  { %v418_v19 = vpop.permute.xlu0 %417 }
 0x3d4   :  { %v422_v20 = vrot.slane %v418_v19, %v264_v48 }
 0x3d6   :  { %598 = vmatmul.mubr.msk.f32.vlgmr.msra.gmra.mrb[2].mxu1 %vm342_vm5, %v422_v20 }
 0x3d7   :  { %v337_v24 = vpop.permute.xlu0 %336 }
 0x3d8   :  { %v341_v25 = vrot.slane %v337_v24, %v264_v48 }
 0x3da   :  { %593 = vmatmul.mubr.msk.f32.vlgmr.msra.gmra.mrb[2].mxu0 %vm342_vm5, %v341_v25  ;;  %v502_v27 = vsel %vm270_vm3, %v422_v20, %v341_v25 }
 0x3db   :  { %504 = vst.msk [vmem:[#allocation4] sm:$0x3] %vm273_vm4, %v502_v27 }
 0x3dc   :  { %517 = vst.msk [vmem:[#allocation4] sm:$0x3] %vm516_vm6, %v514_v28 }
 0x3dd   :  { %644 = shalt.err (!%p641_p4)
}
 0x3de   :  { %s645_s11 = scalar_lea.hbm %s844_s8, 32 }
 0x3df   :  { %p646_p5 = scmp.ne.s32.totalorder %s844_s8, %s645_s11  ;;  %p649_p6 = scmp.lt.u32.totalorder %s645_s11, %s844_s8 }
 0x3e1   :  { %p651_p7 = pnand %p649_p6, %p646_p5 }
 0x3e3   :  { %654 = shalt.err (!%p651_p7)
}
 0x3e4   :  { %537 = dma.vmem_to_hbm [thread:$0]  %s535_s29, 32, %s844_s8, [#allocation5]   ;;  %vm500_vm7 = vcmask 254976  }
 0x3e5   :  { %s687_s18 = smov [#allocation2]  }
 0x3e6   :  { %s524_s19 = sshll.u32 %s687_s18, 4  ;;  %s525_s19 = int_to_ptr.vmem [resolvable:$true] %s524_s19 }
 0x3e7   :  { %s655_s20 = scalar_lea.vmem %s525_s19, 32  ;;  %p660_p9 = scmp.lt.s32.totalorder %s525_s19, %s525_s19 }
 0x3e8   :  { %p656_p8 = scmp.ne.s32.totalorder %s525_s19, %s655_s20  ;;  %p661_p10 = scmp.lt.s32.totalorder %s655_s20, %s655_s20 }
 0x3ea   :  { %p662_p11 = por %p661_p10, %p660_p9 }
 0x3ec   :  { %p663_p12 = pnand %p662_p11, %p656_p8 }
 0x4a9   :  { %v491_v21 = vpop.f32.mrb[2].mxu1 }
 0x4aa   :  { %v599_v29 = vpop.f32.mrb[3].mxu1  ;;  %v497_v30 = vrot.slane %v491_v21, 7 }
 0x4ad   :  { %v411_v31 = vpop.f32.mrb[2].mxu0 }
 0x4ae   :  { %v594_v32 = vpop.f32.mrb[3].mxu0  ;;  %v498_v33 = vsel %vm270_vm3, %v497_v30, %v411_v31 }
 0x4af   :  { %501 = vst.msk [vmem:[#allocation2] sm:$0x3] %vm500_vm7, %v498_v33 }
 0x4b0   :  { %666 = shalt.err (!%p663_p12)
}
 0x4b1   :  { %s667_s22 = scalar_lea.hbm %s843_s7, 32 }
 0x4b2   :  { %p668_p13 = scmp.ne.s32.totalorder %s843_s7, %s667_s22  ;;  %p671_p0 = scmp.lt.u32.totalorder %s667_s22, %s843_s7 }
 0x4b4   :  { %p673_p1 = pnand %p671_p0, %p668_p13 }
 0x4b6   :  { %676 = shalt.err (!%p673_p1)
}
 0x4b7   :  { %527 = dma.vmem_to_hbm [thread:$0]  %s525_s19, 32, %s843_s7, [#allocation3]  }
 0x4b8   :  { %677 = dma.done.wait [#allocation3], 32  }
 0x4b9   :  { %678 = vsyncadd [#allocation3], 4294967264 }
 0x4ba   :  { %679 = dma.done.wait [#allocation5], 32  }
 0x4bb   :  { %680 = vsyncadd [#allocation5], 4294967264 }
 0x4bc   :  { %544 = vsyncpa [#allocation3], 1 }
 0x4bd   :  { %545 = vsyncpa [#allocation5], 1 }

</bundles_post_ra>
